<compile_context>
chip_gen: v7x
topology: tpu7x:2x2x1
jax: 0.10.0
libtpu: 0.0.40
codegen_flags: <defaults>
</compile_context>

<pallas_src>
import jax
import jax.numpy as jnp
from jax.experimental import pallas as pl
from jax.experimental.pallas import tpu as pltpu


# ---------------------------------------------------------------------------
# Kernel 1: beta precompute (batch-invariant; run once per parameter update).
#   phi_w : [K, hidden]   (PyTorch layout of phi.weight)
#   phi_b : [K, 1]
#   psi_wT: [hidden, V]   (psi.weight transposed)
#   beta  : [K, V]        row k = softmax over vocab of (phi(psi.weight))[:, k]
# ---------------------------------------------------------------------------
def beta_kernel(phi_w_ref, phi_b_ref, psi_wT_ref, beta_ref):
    # wkv[k, v] = sum_h phi_w[k, h] * psi_w[v, h] + phi_b[k]
    wkv = (jnp.dot(phi_w_ref[...], psi_wT_ref[...],
                   preferred_element_type=jnp.float32)
           + phi_b_ref[...])                                        # [K, V]
    # softmax over the vocab dimension (dim=0 of the PyTorch [V, K] weight,
    # i.e. axis=-1 here) -> lane-axis reduction.
    wkv = wkv - jnp.max(wkv, axis=-1, keepdims=True)
    ew = jnp.exp(wkv)
    beta_ref[...] = ew * pl.reciprocal(
        jnp.sum(ew, axis=-1, keepdims=True), approx=True)


def compute_beta(params):
    K, _ = params["phi_w"].shape
    V = params["psi_wT"].shape[1]
    vmem = pl.BlockSpec(memory_space=pltpu.MemorySpace.VMEM)
    return pl.pallas_call(
        beta_kernel,
        out_shape=jax.ShapeDtypeStruct((K, V), jnp.float32),
        in_specs=[vmem, vmem, vmem],
        out_specs=vmem,
    )(params["phi_w"], params["phi_b"], params["psi_wT"])


# ---------------------------------------------------------------------------
# Kernel 2: per-forward pass.
#   x      : [B, V]  bf16
#   eps    : [B, K]  f32  (reparameterization noise)
#   w_enc  : [V, H]  bf16 ; b_enc [1, H]
#   w_mu   : [H, K]       ; b_mu  [1, K]
#   w_lv   : [H, K]       ; b_lv  [1, K]
#   w_gsm  : [K, K]       ; b_gsm [1, K]
#   beta   : [K, V]  f32  (precomputed by beta_kernel)
# outputs:
#   logits : [B, V]  f32
#   mulv   : [B, 2K] f32  (mu | logvar, split in the wrapper)
# ---------------------------------------------------------------------------
def nvdm_gsm_kernel(x_ref, eps_ref,
                    w_enc_ref, b_enc_ref,
                    w_mu_ref, b_mu_ref,
                    w_lv_ref, b_lv_ref,
                    w_gsm_ref, b_gsm_ref,
                    beta_ref,
                    logits_ref, mulv_ref):
    # ---- encode: hid = relu(x @ W_enc + b_enc) --------------------------
    hid = jnp.maximum(
        jnp.dot(x_ref[...], w_enc_ref[...],
                preferred_element_type=jnp.float32) + b_enc_ref[...],
        0.0)                                                         # [B, H] f32

    # ---- mu / logvar heads ----------------------------------------------
    mu = (jnp.dot(hid, w_mu_ref[...], preferred_element_type=jnp.float32)
          + b_mu_ref[...])                                           # [B, K]
    logvar = (jnp.dot(hid, w_lv_ref[...], preferred_element_type=jnp.float32)
              + b_lv_ref[...])                                       # [B, K]

    # ---- reparameterize: z = mu + eps * exp(logvar / 2) -----------------
    z = mu + eps_ref[...] * jnp.exp(logvar * 0.5)                    # [B, K]

    # ---- theta = softmax(fc_gsm(z), dim=1) -------------------------------
    g = (jnp.dot(z, w_gsm_ref[...], preferred_element_type=jnp.float32)
         + b_gsm_ref[...])                                           # [B, K]
    g = g - jnp.max(g, axis=-1, keepdims=True)
    eg = jnp.exp(g)
    theta = eg * pl.reciprocal(jnp.sum(eg, axis=-1, keepdims=True), approx=True)

    # ---- decode: logits = theta @ beta  ([B,K] @ [K,V] -> [B,V]) ---------
    logits_ref[...] = jnp.dot(theta, beta_ref[...],
                              preferred_element_type=jnp.float32)

    # ---- fused (mu | logvar) output --------------------------------------
    mulv_ref[...] = jnp.concatenate([mu, logvar], axis=-1)           # [B, 2K]


def nvdm_gsm_forward(x, eps, beta, params):
    B, V = x.shape
    K = params["w_mu"].shape[1]

    vmem = pl.BlockSpec(memory_space=pltpu.MemorySpace.VMEM)
    args = (x.astype(jnp.bfloat16), eps,
            params["w_enc"].astype(jnp.bfloat16), params["b_enc"],
            params["w_mu"], params["b_mu"],
            params["w_lv"], params["b_lv"],
            params["w_gsm"], params["b_gsm"],
            beta)

    out_shape = (jax.ShapeDtypeStruct((B, V), jnp.float32),      # logits
                 jax.ShapeDtypeStruct((B, 2 * K), jnp.float32))  # mu | logvar

    logits, mulv = pl.pallas_call(
        nvdm_gsm_kernel,
        out_shape=out_shape,
        in_specs=[vmem] * len(args),
        out_specs=(vmem, vmem),
    )(*args)

    mu = mulv[:, :K]
    logvar = mulv[:, K:]
    return logits, mu, logvar


# ---------------------------------------------------------------------------
# Deterministic synthetic parameter init (matches the PyTorch module layout,
# stored in the layouts the kernels consume).
# ---------------------------------------------------------------------------
def init_params(key, encode_dims, hidden_dim):
    V, H, K = encode_dims
    ks = jax.random.split(key, 8)

    def lin(k, fan_in, fan_out):
        # uniform(-1/sqrt(fan_in), 1/sqrt(fan_in)), like torch default
        bound = 1.0 / jnp.sqrt(fan_in)
        kw, kb = jax.random.split(k)
        w = jax.random.uniform(kw, (fan_in, fan_out), jnp.float32, -bound, bound)
        b = jax.random.uniform(kb, (1, fan_out), jnp.float32, -bound, bound)
        return w, b

    w_enc, b_enc = lin(ks[0], V, H)              # encoder[0]  ([in, out])
    w_mu, b_mu = lin(ks[1], H, K)                # fc_mu
    # fc_logvar: nn.init.constant_(weight, 0) and constant_(bias, 0)
    w_lv = jnp.zeros((H, K), jnp.float32)
    b_lv = jnp.zeros((1, K), jnp.float32)
    w_gsm, b_gsm = lin(ks[2], K, K)              # fc_gsm

    # phi in PyTorch layout [K, hidden]; bias as a column [K, 1]
    bound_phi = 1.0 / jnp.sqrt(hidden_dim)
    kpw, kpb = jax.random.split(ks[3])
    phi_w = jax.random.uniform(kpw, (K, hidden_dim), jnp.float32,
                               -bound_phi, bound_phi)
    phi_b = jax.random.uniform(kpb, (K, 1), jnp.float32, -bound_phi, bound_phi)

    # psi.weight is [V, hidden] in PyTorch; store its transpose [hidden, V]
    psi_wT = jax.random.uniform(ks[4], (hidden_dim, V), jnp.float32,
                                -bound_phi, bound_phi)

    return dict(w_enc=w_enc, b_enc=b_enc,
                w_mu=w_mu, b_mu=b_mu,
                w_lv=w_lv, b_lv=b_lv,
                w_gsm=w_gsm, b_gsm=b_gsm,
                phi_w=phi_w, phi_b=phi_b,
                psi_wT=psi_wT)


if __name__ == "__main__":
    encode_dims = [256, 128, 32]   # [vocab_size, hidden, num_topics]
    hidden_dim = 64
    B = 8

    key = jax.random.PRNGKey(0)
    k_param, k_x, k_eps = jax.random.split(key, 3)

    params = init_params(k_param, encode_dims, hidden_dim)

    # bag-of-words style non-negative input
    x = jax.random.uniform(k_x, (B, encode_dims[0]), jnp.float32, 0.0, 2.0)
    # reparameterization noise (randn_like(mu) in the reference)
    eps = jax.random.normal(k_eps, (B, encode_dims[-1]), jnp.float32)

    # batch-invariant decode weight: compute once per parameter update
    beta = compute_beta(params)
    jax.block_until_ready(beta)

    logits, mu, logvar = nvdm_gsm_forward(x, eps, beta, params)
    jax.block_until_ready((logits, mu, logvar))

    assert logits.shape == (B, encode_dims[0])
    assert mu.shape == (B, encode_dims[-1])
    assert logvar.shape == (B, encode_dims[-1])
    print("KERNEL_OK")
</pallas_src>

<mosaic_0001>
module attributes {stable_mosaic.version = 11 : i64} {
  func.func @beta_kernel(%arg0: memref<32x64xf32, #tpu.memory_space<vmem>>, %arg1: memref<32x1xf32, #tpu.memory_space<vmem>>, %arg2: memref<64x256xf32, #tpu.memory_space<vmem>>, %arg3: memref<32x256xf32, #tpu.memory_space<vmem>>) attributes {dimension_semantics = [], scalar_prefetch = 0 : i64, scratch_operands = 0 : i64, tpu.core_type = #tpu.core_type<tc>} {
    %c0 = arith.constant 0 : index
    %c0_0 = arith.constant 0 : index
    %0 = vector.load %arg0[%c0, %c0_0] : memref<32x64xf32, #tpu.memory_space<vmem>>, vector<32x64xf32>
    %c0_1 = arith.constant 0 : index
    %c0_2 = arith.constant 0 : index
    %1 = vector.load %arg2[%c0_1, %c0_2] : memref<64x256xf32, #tpu.memory_space<vmem>>, vector<64x256xf32>
    %cst = arith.constant dense<0.000000e+00> : vector<32x256xf32>
    %2 = tpu.matmul %0, %1, %cst {dimension_numbers = #tpu.dot_dimension_numbers<[1], [0], [0], [1], [0, 0, 1, 1], [], []>} : vector<32x64xf32>, vector<64x256xf32>, vector<32x256xf32> -> vector<32x256xf32>
    %c0_3 = arith.constant 0 : index
    %c0_4 = arith.constant 0 : index
    %3 = vector.load %arg1[%c0_3, %c0_4] : memref<32x1xf32, #tpu.memory_space<vmem>>, vector<32x1xf32>
    %4 = vector.broadcast %3 : vector<32x1xf32> to vector<32x256xf32>
    %5 = arith.addf %2, %4 : vector<32x256xf32>
    %cst_5 = arith.constant dense<0xFF800000> : vector<32xf32>
    %6 = vector.multi_reduction <maximumf>, %5, %cst_5 [1] : vector<32x256xf32> to vector<32xf32>
    %7 = vector.shape_cast %6 : vector<32xf32> to vector<32x1xf32>
    %8 = vector.broadcast %7 : vector<32x1xf32> to vector<32x256xf32>
    %9 = arith.subf %5, %8 : vector<32x256xf32>
    %10 = math.exp %9 : vector<32x256xf32>
    %cst_6 = arith.constant dense<0.000000e+00> : vector<32xf32>
    %11 = vector.multi_reduction <add>, %10, %cst_6 [1] : vector<32x256xf32> to vector<32xf32>
    %12 = vector.shape_cast %11 : vector<32xf32> to vector<32x1xf32>
    %13 = tpu.reciprocal %12 {approx = true} : vector<32x1xf32> -> vector<32x1xf32>
    %14 = vector.broadcast %13 : vector<32x1xf32> to vector<32x256xf32>
    %15 = arith.mulf %10, %14 : vector<32x256xf32>
    %c0_7 = arith.constant 0 : index
    %c0_8 = arith.constant 0 : index
    %16 = vector.load %arg3[%c0_7, %c0_8] : memref<32x256xf32, #tpu.memory_space<vmem>>, vector<32x256xf32>
    tpu.vector_store %arg3[%c0_7, %c0_8], %15 {strides = array<i32>} : memref<32x256xf32, #tpu.memory_space<vmem>>, vector<32x256xf32>,
    return
  }
}

</mosaic_0001>

<bundles_post_ra>
// kernel: tpu_custom_call.1
= control target key start
LH: loop header
LB: loop body
LE: loop exit
PB: predicated region body
PF: predicated region fallthrough
CT: control target
= control target key end

     0   :  { %8 = vsyncpa [#allocation3], 0  ;;  %s448_s0 = inlined_call_operand.vmem [shape: f32[32,64], index: 0, kind: input, shape index: {}]   ;;  %s449_s1 = inlined_call_operand.vmem [shape: f32[32,1], index: 1, kind: input, shape index: {}]   ;;  %s450_s2 = inlined_call_operand.hbm [shape: f32[64,256], index: 2, kind: input, shape index: {}]   ;;  %s451_s3 = inlined_call_operand.hbm [shape: f32[32,256], index: 3, kind: output, shape index: {}]  }
   0x1   :  { %9 = vsyncpa [#allocation4], 0  ;;  %s368_s12 = smov [#allocation2]   ;;  %s320_s16 = scalar_lea.hbm %s450_s2, 2048 }
   0x2   :  { %s19_s13 = sshll.u32 %s368_s12, 4  ;;  %p321_p0 = scmp.ne.s32.totalorder %s450_s2, %s320_s16  ;;  %s20_s13 = int_to_ptr.vmem [resolvable:$true] %s19_s13 }
   0x3   :  { %p324_p1 = scmp.lt.u32.totalorder %s320_s16, %s450_s2 }
   0x5   :  { %p326_p2 = pnand %p324_p1, %p321_p0 }
   0x7   :  { %329 = shalt.err (!%p326_p2)
}
   0x8   :  { %s330_s21 = scalar_lea.vmem %s20_s13, 2048  ;;  %p335_p4 = scmp.lt.s32.totalorder %s20_s13, %s20_s13 }
   0x9   :  { %p331_p3 = scmp.ne.s32.totalorder %s20_s13, %s330_s21  ;;  %p336_p5 = scmp.lt.s32.totalorder %s330_s21, %s330_s21 }
   0xb   :  { %p337_p6 = por %p336_p5, %p335_p4 }
   0xd   :  { %p338_p7 = pnand %p337_p6, %p331_p3 }
   0xf   :  { %341 = shalt.err (!%p338_p7)
}
  0x10   :  { %s369_s22 = smov 256   ;;  %s370_s23 = smov 16  }
  0x11   :  { %25 = dma.hbm_to_vmem [thread:$0]  %s450_s2, 2048, %s20_s13, [#allocation3], %s369_s22, %s369_s22, %s370_s23  }
  0x12   :  { %364 = dma.done.wait [#allocation3], 2048  }
  0x13   :  { %365 = vsyncadd [#allocation3], 4294965248  ;;  %v371_v0 = vmov 0.0   ;;  %v372_v1 = vmov 0   ;;  %v34_v2 = vld [vmem:[#allocation2 + $0x8] sm:$0xff]  ;;  %v36_v3 = vld [vmem:[#allocation2 + $0x18] sm:$0xff] }
  0x14   :  { %150 = vmatprep.mubr.f32.mxu0 %v371_v0  ;;  %162 = vmatprep.mubr.f32.mxu1 %v371_v0  ;;  %v33_v4 = vld [vmem:[#allocation2] sm:$0xff]  ;;  %v264_v5 = vpack.c.bf16 %v36_v3, %v34_v2  ;;  %v35_v6 = vld [vmem:[#allocation2 + $0x10] sm:$0xff]  ;;  %v38_v7 = vld [vmem:[#allocation2 + $0x28] sm:$0xff]  ;;  %vm73_vm0 = vcmask 523264  }
  0x15   :  { %294 = vset.pattern.permute.xlu0 %v372_v1  ;;  %295 = vset.pattern.permute.xlu1 %v372_v1  ;;  %v40_v8 = vld [vmem:[#allocation2 + $0x38] sm:$0xff]  ;;  %v266_v9 = vpack.c.bf16 %v35_v6, %v33_v4  ;;  %v37_v11 = vld [vmem:[#allocation2 + $0x20] sm:$0xff]  ;;  %v39_v12 = vld [vmem:[#allocation2 + $0x30] sm:$0xff] }
  0x16   :  { %v268_v10 = vpack.c.bf16 %v40_v8, %v38_v7  ;;  %v42_v13 = vld [vmem:[#allocation2 + $0x48] sm:$0xff]  ;;  %265 = vmatprep.subr.bf16.mxu0 %v264_v5  ;;  %280 = vmatprep.subr.bf16.mxu1 %v264_v5  ;;  %v44_v14 = vld [vmem:[#allocation2 + $0x58] sm:$0xff]  ;;  %v270_v15 = vpack.c.bf16 %v39_v12, %v37_v11  ;;  %v41_v17 = vld [vmem:[#allocation2 + $0x40] sm:$0xff] }
  0x17   :  { %267 = vmatpush1.bf16.msra.mxu0 %v266_v9  ;;  %284 = vmatpush1.bf16.msra.mxu1 %v266_v9  ;;  %v272_v16 = vpack.c.bf16 %v44_v14, %v42_v13  ;;  %v43_v18 = vld [vmem:[#allocation2 + $0x50] sm:$0xff]  ;;  %v46_v19 = vld [vmem:[#allocation2 + $0x68] sm:$0xff]  ;;  %v48_v20 = vld [vmem:[#allocation2 + $0x78] sm:$0xff] }
  0x18   :  { %269 = vmatprep.subr.bf16.mxu0 %v268_v10  ;;  %281 = vmatprep.subr.bf16.mxu1 %v268_v10  ;;  %v49_v21 = vld [vmem:[%s449_s1] sm:$0xff]  ;;  %v51_v22 = vld [vmem:[%s449_s1 + $0x10] sm:$0xff]  ;;  %v274_v23 = vpack.c.bf16 %v43_v18, %v41_v17  ;;  %v50_v24 = vld [vmem:[%s449_s1 + $0x8] sm:$0xff]  ;;  %v276_v25 = vpack.c.bf16 %v48_v20, %v46_v19 }
  0x19   :  { %55 = vperm.xlu0 %294, %v49_v21   ;;  %v45_v26 = vld [vmem:[#allocation2 + $0x60] sm:$0xff]  ;;  %v47_v27 = vld [vmem:[#allocation2 + $0x70] sm:$0xff]  ;;  %65 = vperm.xlu1 %295, %v51_v22   ;;  %v52_v28 = vld [vmem:[%s449_s1 + $0x18] sm:$0xff] }
  0x1a   :  { %v278_v29 = vpack.c.bf16 %v47_v27, %v45_v26  ;;  %v29_v30 = vld [vmem:[%s448_s0] sm:$0xff]  ;;  %v31_v31 = vld [vmem:[%s448_s0 + $0x10] sm:$0xff]  ;;  %v30_v32 = vld [vmem:[%s448_s0 + $0x8] sm:$0xff] }
  0x1b   :  { %271 = vmatpush1.bf16.msra.mxu0 %v270_v15  ;;  %285 = vmatpush1.bf16.msra.mxu1 %v270_v15  ;;  %v32_v33 = vld [vmem:[%s448_s0 + $0x18] sm:$0xff]  ;;  %s373_s0 = smov [#allocation5]  }
  0x1c   :  { %273 = vmatprep.subr.bf16.mxu0 %v272_v16  ;;  %282 = vmatprep.subr.bf16.mxu1 %v272_v16  ;;  %s248_s13 = sshll.u32 %s373_s0, 4  ;;  %s249_s13 = int_to_ptr.vmem [resolvable:$true] %s248_s13 }
  0x1d   :  { %60 = vperm.xlu0 %294, %v50_v24   ;;  %70 = vperm.xlu1 %295, %v52_v28   ;;  %s342_s14 = scalar_lea.vmem %s249_s13, 1024  ;;  %p347_p9 = scmp.lt.s32.totalorder %s249_s13, %s249_s13 }
  0x1e   :  { %p343_p8 = scmp.ne.s32.totalorder %s249_s13, %s342_s14  ;;  %p348_p10 = scmp.lt.s32.totalorder %s342_s14, %s342_s14 }
  0x1f   :  { %275 = vmatpush1.bf16.msra.mxu0 %v274_v23  ;;  %286 = vmatpush1.bf16.msra.mxu1 %v274_v23 }
  0x20   :  { %277 = vmatprep.subr.bf16.mxu0 %v276_v25  ;;  %283 = vmatprep.subr.bf16.mxu1 %v276_v25  ;;  %p349_p11 = por %p348_p10, %p347_p9 }
  0x22   :  { %p350_p12 = pnand %p349_p11, %p343_p8 }
  0x23   :  { %279 = vmatpush1.bf16.msra.mxu0 %v278_v29  ;;  %287 = vmatpush1.bf16.msra.mxu1 %v278_v29 }
  0x26   :  { %260 = vmatmul.mubr.msk.f32.vlgmr.msra.gmra.mrb[0].mxu0 %vm73_vm0, %v29_v30  ;;  %262 = vmatmul.mubr.msk.f32.vlgmr.msra.gmra.mrb[0].mxu1 %vm73_vm0, %v31_v31 }
  0x27   :  { %156 = vmatprep.mubr.f32.mxu0 %v371_v0  ;;  %168 = vmatprep.mubr.f32.mxu1 %v371_v0 }
  0x2a   :  { %261 = vmatmul.mubr.msk.f32.gmra.mrb[2].mxu0 %vm73_vm0, %v30_v32  ;;  %263 = vmatmul.mubr.msk.f32.gmra.mrb[2].mxu1 %vm73_vm0, %v32_v33 }
  0x98   :  { %v56_v34 = vpop.permute.xlu0 %55  ;;  %v66_v35 = vpop.permute.xlu1 %65 }
  0x9c   :  { %v61_v44 = vpop.permute.xlu0 %60  ;;  %v71_v45 = vpop.permute.xlu1 %70 }
  0xf9   :  { %v152_v36 = vpop.f32.mrb[0].mxu0  ;;  %v164_v37 = vpop.f32.mrb[0].mxu1 }
  0xfa   :  { %v153_v38 = vadd.f32 %v152_v36, %v56_v34  ;;  %v154_v39 = vpop.f32.mrb[1].mxu0  ;;  %v166_v40 = vpop.f32.mrb[1].mxu1  ;;  %v165_v42 = vadd.f32 %v164_v37, %v66_v35 }
  0xfb   :  { %v155_v41 = vadd.f32 %v154_v39, %v56_v34  ;;  %v167_v43 = vadd.f32 %v166_v40, %v66_v35 }
  0xfd   :  { %v158_v46 = vpop.f32.mrb[2].mxu0  ;;  %v170_v47 = vpop.f32.mrb[2].mxu1  ;;  %v175_v48 = vmax.f32 %v153_v38, %v155_v41  ;;  %v181_v53 = vmax.f32 %v165_v42, %v167_v43 }
  0xfe   :  { %v159_v49 = vadd.f32 %v158_v46, %v61_v44  ;;  %v160_v50 = vpop.f32.mrb[3].mxu0  ;;  %v172_v51 = vpop.f32.mrb[3].mxu1  ;;  %v171_v54 = vadd.f32 %v170_v47, %v71_v45 }
  0xff   :  { %v161_v52 = vadd.f32 %v160_v50, %v61_v44  ;;  %176 = vmax.xlane.f32.xlu0 %v175_v48  ;;  %v173_v55 = vadd.f32 %v172_v51, %v71_v45 }
 0x101   :  { %v178_v56 = vmax.f32 %v159_v49, %v161_v52  ;;  %v184_v57 = vmax.f32 %v171_v54, %v173_v55 }
 0x103   :  { %179 = vmax.xlane.f32.xlu1 %v178_v56  ;;  %182 = vmax.xlane.f32.xlu0 %v181_v53 }
 0x107   :  { %185 = vmax.xlane.f32.xlu0 %v184_v57 }
 0x18c   :  { %v177_v58 = vpop.xlane.xlu0 %176 }
 0x18d   :  { %v187_v59 = vsub.f32 %v153_v38, %v177_v58  ;;  %v188_v60 = vsub.f32 %v155_v41, %v177_v58 }
 0x18f   :  { %v195_v61 = vmul.f32 1.442695, %v187_v59  ;;  %v197_v62 = vmul.f32 1.442695, %v188_v60 }
 0x190   :  { %v180_v63 = vpop.xlane.xlu1 %179  ;;  %v183_v0 = vpop.xlane.xlu0 %182 }
 0x191   :  { %296 = vpow2.f32 %v195_v61  ;;  %v189_v1 = vsub.f32 %v159_v49, %v180_v63  ;;  %v190_v2 = vsub.f32 %v161_v52, %v180_v63  ;;  %v191_v3 = vsub.f32 %v165_v42, %v183_v0 }
 0x192   :  { %298 = vpow2.f32 %v197_v62  ;;  %v192_v4 = vsub.f32 %v167_v43, %v183_v0 }
 0x193   :  { %v199_v5 = vmul.f32 1.442695, %v189_v1  ;;  %v201_v6 = vmul.f32 1.442695, %v190_v2  ;;  %v203_v7 = vmul.f32 1.442695, %v191_v3 }
 0x194   :  { %v205_v8 = vmul.f32 1.442695, %v192_v4  ;;  %v186_v9 = vpop.xlane.xlu0 %185 }
 0x195   :  { %300 = vpow2.f32 %v199_v5  ;;  %v193_v10 = vsub.f32 %v171_v54, %v186_v9  ;;  %v194_v11 = vsub.f32 %v173_v55, %v186_v9 }
 0x196   :  { %302 = vpow2.f32 %v201_v6 }
 0x197   :  { %304 = vpow2.f32 %v203_v7  ;;  %v207_v12 = vmul.f32 1.442695, %v193_v10  ;;  %v209_v13 = vmul.f32 1.442695, %v194_v11 }
 0x198   :  { %306 = vpow2.f32 %v205_v8 }
 0x199   :  { %308 = vpow2.f32 %v207_v12 }
 0x19a   :  { %310 = vpow2.f32 %v209_v13 }
 0x19b   :  { %v297_v14 = vpop.eup %296 }
 0x19c   :  { %v299_v15 = vpop.eup %298 }
 0x19d   :  { %v211_v16 = vadd.f32 %v299_v15, %v297_v14 }
 0x19f   :  { %v301_v17 = vpop.eup %300  ;;  %212 = vadd.xlane.f32.xlu1 %v211_v16 }
 0x1a0   :  { %v303_v18 = vpop.eup %302 }
 0x1a1   :  { %v305_v19 = vpop.eup %304  ;;  %v214_v20 = vadd.f32 %v303_v18, %v301_v17 }
 0x1a2   :  { %v307_v21 = vpop.eup %306 }
 0x1a3   :  { %v309_v22 = vpop.eup %308  ;;  %215 = vadd.xlane.f32.xlu0 %v214_v20  ;;  %v217_v23 = vadd.f32 %v307_v21, %v305_v19 }
 0x1a4   :  { %v311_v24 = vpop.eup %310 }
 0x1a5   :  { %218 = vadd.xlane.f32.xlu1 %v217_v23  ;;  %v220_v25 = vadd.f32 %v311_v24, %v309_v22 }
 0x1a7   :  { %221 = vadd.xlane.f32.xlu0 %v220_v25 }
 0x22c   :  { %v213_v26 = vpop.xlane.xlu1 %212 }
 0x22d   :  { %312 = vrcp.f32 %v213_v26 }
 0x230   :  { %v216_v27 = vpop.xlane.xlu0 %215 }
 0x231   :  { %314 = vrcp.f32 %v216_v27 }
 0x232   :  { %v219_v28 = vpop.xlane.xlu1 %218 }
 0x233   :  { %316 = vrcp.f32 %v219_v28 }
 0x234   :  { %v222_v29 = vpop.xlane.xlu0 %221 }
 0x235   :  { %318 = vrcp.f32 %v222_v29 }
 0x237   :  { %v313_v30 = vpop.eup %312 }
 0x238   :  { %v227_v31 = vmul.f32 %v313_v30, %v297_v14  ;;  %v228_v32 = vmul.f32 %v313_v30, %v299_v15 }
 0x23a   :  { %235 = vst [vmem:[#allocation5] sm:$0xff] %v227_v31  ;;  %236 = vst [vmem:[#allocation5 + $0x8] sm:$0xff] %v228_v32 }
 0x23b   :  { %v315_v33 = vpop.eup %314 }
 0x23c   :  { %v229_v34 = vmul.f32 %v315_v33, %v301_v17  ;;  %v230_v35 = vmul.f32 %v315_v33, %v303_v18 }
 0x23d   :  { %v317_v36 = vpop.eup %316 }
 0x23e   :  { %v231_v37 = vmul.f32 %v317_v36, %v305_v19  ;;  %v232_v38 = vmul.f32 %v317_v36, %v307_v21  ;;  %237 = vst [vmem:[#allocation5 + $0x10] sm:$0xff] %v229_v34  ;;  %238 = vst [vmem:[#allocation5 + $0x18] sm:$0xff] %v230_v35 }
 0x23f   :  { %v319_v39 = vpop.eup %318 }
 0x240   :  { %239 = vst [vmem:[#allocation5 + $0x20] sm:$0xff] %v231_v37  ;;  %240 = vst [vmem:[#allocation5 + $0x28] sm:$0xff] %v232_v38  ;;  %v233_v40 = vmul.f32 %v319_v39, %v309_v22  ;;  %v234_v41 = vmul.f32 %v319_v39, %v311_v24 }
 0x242   :  { %241 = vst [vmem:[#allocation5 + $0x30] sm:$0xff] %v233_v40  ;;  %242 = vst [vmem:[#allocation5 + $0x38] sm:$0xff] %v234_v41 }
 0x243   :  { %353 = shalt.err (!%p350_p12)
}
 0x244   :  { %s354_s17 = scalar_lea.hbm %s451_s3, 1024 }
 0x245   :  { %p355_p13 = scmp.ne.s32.totalorder %s451_s3, %s354_s17  ;;  %p358_p0 = scmp.lt.u32.totalorder %s354_s17, %s451_s3 }
 0x247   :  { %p360_p1 = pnand %p358_p0, %p355_p13 }
 0x249   :  { %363 = shalt.err (!%p360_p1)
}
 0x24a   :  { %254 = dma.vmem_to_hbm [thread:$0]  %s249_s13, 1024, %s451_s3, [#allocation4], %s369_s22, %s369_s22, %s370_s23  }
 0x24b   :  { %366 = dma.done.wait [#allocation4], 1024  }
 0x24c   :  { %367 = vsyncadd [#allocation4], 4294966272 }
 0x24d   :  { %258 = vsyncpa [#allocation3], 1 }
 0x24e   :  { %259 = vsyncpa [#allocation4], 1 }

</bundles_post_ra>
